<compile_context>
chip_gen: v5e
topology: v5e:2x2
jax: 0.10.0
libtpu: 0.0.40
codegen_flags: <defaults>
</compile_context>

<pallas_src>
import math

import jax
import jax.numpy as jnp
from jax import lax
from jax.experimental import pallas as pl
from jax.experimental.pallas import tpu as pltpu

LANE = 128             # lane width: hidden/embed dims padded to this
FIRST_IN_QUANTUM = 16  # bf16 sublane quantum: only the first layer's input dim pads to this
BATCH_QUANTUM = 128    # batch padding quantum (decoupled from tile size)


def _round_up(n, m):
    return ((n + m - 1) // m) * m


def _pick_div_tile(total, max_tile, quantum):
    """Largest multiple of `quantum` that divides `total` and is <= max_tile."""
    t = min(max_tile, total)
    t = max((t // quantum) * quantum, quantum)
    while total % t:
        t -= quantum
    return t


def _row_tile(b_pad, max_tile):
    """Row (sublane) tile; keep >=2 grid steps when possible so both v7x TCs get work."""
    tb = _pick_div_tile(b_pad, max_tile, 8)
    if b_pad // tb < 2 and b_pad >= 16:
        tb = _pick_div_tile(b_pad, b_pad // 2, 8)
    return tb


def _vmem_limit_bytes():
    # ~96 MiB on v5e/v6e (128 MiB physical), ~48 MiB on v7x (64 MiB physical).
    try:
        return int(pltpu.get_tpu_info().vmem_capacity_bytes * 3 // 4)
    except Exception:
        return 48 * 1024 * 1024


def _compiler_params(n_grid_axes):
    return pltpu.CompilerParams(
        dimension_semantics=("parallel",) * n_grid_axes,
        vmem_limit_bytes=_vmem_limit_bytes())


# ----------------------------------------------------------------------------
# Kernels
# ----------------------------------------------------------------------------
def make_towers_kernel(n_layers):
    """Both MLP towers fused in one kernel.

    refs: [x_tile, y_tile, gw0, gb0, ..., hw0, hb0, ..., g_out, h_out]
      x_tile/y_tile : (tb, Dx_p)/(tb, Dy_p)  bf16 VMEM (gridded over batch)
      w_i           : (Di_p, Dj_p)           bf16 VMEM (resident)
      b_i           : (1, Dj_p)              f32  VMEM (resident)
      g_out/h_out   : (tb, E_p)              bf16 VMEM
    ReLU after every layer except the last (matches nn.Sequential).
    """

    def kernel(*refs):
        x_ref, y_ref = refs[0], refs[1]
        g_out, h_out = refs[-2], refs[-1]
        wb = refs[2:-2]
        g_wb, h_wb = wb[:2 * n_layers], wb[2 * n_layers:]

        def tower(inp_ref, params):
            h = inp_ref[...]                        # bf16 activations
            for i in range(n_layers):
                w = params[2 * i][...]              # bf16, padded, resident
                b = params[2 * i + 1][...]          # f32
                h = jnp.dot(h, w, preferred_element_type=jnp.float32) + b
                if i < n_layers - 1:
                    h = jnp.maximum(h, 0.0).astype(jnp.bfloat16)   # VPU ReLU
            return h                                # f32 after the last Linear

        g_out[...] = tower(x_ref, g_wb).astype(g_out.dtype)
        h_out[...] = tower(y_ref, h_wb).astype(h_out.dtype)

    return kernel


def make_scores_kernel(divergence):
    """scores_tile = g_tile @ h_tile^T (bf16 in, f32 acc), then fused last activation."""

    def kernel(g_ref, h_ref, out_ref):
        g = g_ref[...]            # (tb, E_p) bf16
        hm = h_ref[...]           # (tn, E_p) bf16
        s = lax.dot_general(g, hm, (((1,), (1,)), ((), ())),
                            preferred_element_type=jnp.float32)  # (tb, tn) f32
        if divergence == 'GAN':                     # sigmoid via tanh: one EUP op
            s = 0.5 * (jnp.tanh(s * 0.5) + 1.0)
        elif divergence in ('KL', 'HD'):            # numerically stable softplus
            s = jnp.maximum(s, 0.0) + jnp.log(1.0 + jnp.exp(-jnp.abs(s)))
        # else: identity
        out_ref[...] = s.astype(out_ref.dtype)

    return kernel


# ----------------------------------------------------------------------------
# Parameters (torch.nn.Linear-style init) + padding
# ----------------------------------------------------------------------------
def init_mlp_params(key, in_dim, hidden_dim, out_dim, layers):
    """mlp(dim, hidden, out, layers): Linear(dim,h), ReLU, layers x [Linear(h,h), ReLU], Linear(h,out)."""
    dims = [in_dim] + [hidden_dim] * (layers + 1) + [out_dim]
    params = []
    for i in range(len(dims) - 1):
        fi, fo = dims[i], dims[i + 1]
        key, kw, kb = jax.random.split(key, 3)
        bound = 1.0 / math.sqrt(fi)
        w = jax.random.uniform(kw, (fi, fo), jnp.float32, -bound, bound)
        b = jax.random.uniform(kb, (fo,), jnp.float32, -bound, bound)
        params.append((w, b))
    return params


def pad_params(params):
    """Zero-pad dims; weights -> bf16, biases stay f32.

    Output dims pad to 128 lanes.  Input dim of the first layer pads only to the bf16
    sublane quantum (16); later input dims pad to 128 to match the previous layer's
    padded output.  Padded entries are zero, so they never contribute to any dot.
    """
    padded = []
    for idx, (w, b) in enumerate(params):
        fi, fo = w.shape
        fi_p = _round_up(fi, FIRST_IN_QUANTUM if idx == 0 else LANE)
        fo_p = _round_up(fo, LANE)
        w_p = jnp.pad(w, ((0, fi_p - fi), (0, fo_p - fo))).astype(jnp.bfloat16)
        b_p = jnp.pad(b.reshape(1, -1), ((0, 0), (0, fo_p - fo))).astype(jnp.float32)
        padded.append((w_p, b_p))
    return padded


# ----------------------------------------------------------------------------
# Pallas wrappers
# ----------------------------------------------------------------------------
def _towers_pallas(x, y, g_padded, h_padded, tb, b_pad):
    """Returns bf16 padded embeddings g_emb, h_emb of shape (b_pad, E_p)."""
    B, Dx = x.shape
    _, Dy = y.shape
    dx_p = g_padded[0][0].shape[0]
    dy_p = h_padded[0][0].shape[0]
    e_pad = g_padded[-1][0].shape[1]
    n_layers = len(g_padded)

    x_p = jnp.pad(x, ((0, b_pad - B), (0, dx_p - Dx))).astype(jnp.bfloat16)
    y_p = jnp.pad(y, ((0, b_pad - B), (0, dy_p - Dy))).astype(jnp.bfloat16)

    flat = [x_p, y_p]
    in_specs = [pl.BlockSpec((tb, dx_p), lambda i: (i, 0)),
                pl.BlockSpec((tb, dy_p), lambda i: (i, 0))]
    all_params = list(g_padded) + list(h_padded)
    for w, b in all_params:
        flat += [w, b]
        in_specs.append(pl.BlockSpec(w.shape, lambda i: (0, 0)))   # weights stay resident
        in_specs.append(pl.BlockSpec(b.shape, lambda i: (0, 0)))

    flops = 2 * b_pad * sum(int(w.shape[0]) * int(w.shape[1]) for w, _ in all_params)
    bytes_accessed = (int(x_p.size) * 2 + int(y_p.size) * 2 + 2 * b_pad * e_pad * 2
                      + sum(int(w.size) * 2 + int(b.size) * 4 for w, b in all_params))

    g_emb, h_emb = pl.pallas_call(
        make_towers_kernel(n_layers),
        out_shape=(jax.ShapeDtypeStruct((b_pad, e_pad), jnp.bfloat16),
                   jax.ShapeDtypeStruct((b_pad, e_pad), jnp.bfloat16)),
        grid=(b_pad // tb,),
        in_specs=in_specs,
        out_specs=(pl.BlockSpec((tb, e_pad), lambda i: (i, 0)),
                   pl.BlockSpec((tb, e_pad), lambda i: (i, 0))),
        compiler_params=_compiler_params(1),
        cost_estimate=pl.CostEstimate(flops=int(flops), transcendentals=0,
                                      bytes_accessed=int(bytes_accessed)),
    )(*flat)
    return g_emb, h_emb


def _scores_pallas(g_emb, h_emb, divergence, tb, tn, b_pad):
    e_pad = g_emb.shape[1]
    trans_per_elem = {'GAN': 1, 'KL': 2, 'HD': 2}.get(divergence, 0)
    return pl.pallas_call(
        make_scores_kernel(divergence),
        out_shape=jax.ShapeDtypeStruct((b_pad, b_pad), jnp.float32),
        grid=(b_pad // tb, b_pad // tn),
        in_specs=[pl.BlockSpec((tb, e_pad), lambda i, j: (i, 0)),
                  pl.BlockSpec((tn, e_pad), lambda i, j: (j, 0))],
        out_specs=pl.BlockSpec((tb, tn), lambda i, j: (i, j)),
        compiler_params=_compiler_params(2),
        cost_estimate=pl.CostEstimate(
            flops=int(2 * b_pad * b_pad * e_pad),
            transcendentals=int(trans_per_elem * b_pad * b_pad),
            bytes_accessed=int(2 * b_pad * e_pad * 2 + b_pad * b_pad * 4)),
    )(g_emb, h_emb)


def separable_critic_forward(x, y, g_params_padded, h_params_padded,
                             divergence='NONE',
                             tb_tower=1024, tb_scores=512, tn_scores=512):
    """scores = last_activation( g(x) @ h(y)^T ), shape (B, B)."""
    B = x.shape[0]
    b_pad = _round_up(B, BATCH_QUANTUM)            # decoupled from the tile size
    tb_t = _row_tile(b_pad, tb_tower)              # tower batch tile
    tb_s = _row_tile(b_pad, tb_scores)             # scores row tile
    tn_s = _pick_div_tile(b_pad, tn_scores, LANE)  # scores column tile (lane-dense)

    g_emb, h_emb = _towers_pallas(x, y, g_params_padded, h_params_padded, tb_t, b_pad)
    scores = _scores_pallas(g_emb, h_emb, divergence, tb_s, tn_s, b_pad)
    return scores[:B, :B]


# ----------------------------------------------------------------------------
# Pure-JAX reference (matches the PyTorch module in f32)
# ----------------------------------------------------------------------------
def reference_forward(x, y, g_params, h_params, divergence):
    def mlp_ref(a, params):
        h = a.astype(jnp.float32)
        for i, (w, b) in enumerate(params):
            h = h @ w + b
            if i < len(params) - 1:
                h = jnp.maximum(h, 0.0)
        return h

    gx = mlp_ref(x, g_params)
    hy = mlp_ref(y, h_params)
    s = gx @ hy.T
    if divergence == 'GAN':
        return jax.nn.sigmoid(s)
    if divergence in ('KL', 'HD'):
        return jax.nn.softplus(s)
    return s


if __name__ == "__main__":
    key = jax.random.PRNGKey(0)
    kx, ky, kg, kh = jax.random.split(key, 4)

    # Small shapes consistent with the module.
    batch, x_dim, y_dim = 8, 16, 12
    hidden_dim, embed_dim, layers = 32, 16, 1
    divergence = 'KL'   # -> softplus last activation, fused into the scores kernel

    x = jax.random.normal(kx, (batch, x_dim), jnp.float32)
    y = jax.random.normal(ky, (batch, y_dim), jnp.float32)

    g_params = init_mlp_params(kg, x_dim, hidden_dim, embed_dim, layers)
    h_params = init_mlp_params(kh, y_dim, hidden_dim, embed_dim, layers)
    g_padded = pad_params(g_params)
    h_padded = pad_params(h_params)

    out = separable_critic_forward(x, y, g_padded, h_padded, divergence)
    out = jax.block_until_ready(out)

    ref = reference_forward(x, y, g_params, h_params, divergence)
    assert out.shape == (batch, batch), out.shape
    # bf16 matmul inputs / bf16 embeddings (f32 accumulation) vs. pure-f32 reference.
    max_err = float(jnp.max(jnp.abs(out - ref)))
    assert jnp.allclose(out, ref, atol=5e-2, rtol=5e-2), max_err

    print("KERNEL_OK")
</pallas_src>

<mosaic_0001>
module attributes {stable_mosaic.version = 11 : i64} {
  func.func @kernel(%arg0: i32, %arg1: memref<64x16xbf16, #tpu.memory_space<vmem>>, %arg2: memref<64x16xbf16, #tpu.memory_space<vmem>>, %arg3: memref<16x128xbf16, #tpu.memory_space<vmem>>, %arg4: memref<1x128xf32, #tpu.memory_space<vmem>>, %arg5: memref<128x128xbf16, #tpu.memory_space<vmem>>, %arg6: memref<1x128xf32, #tpu.memory_space<vmem>>, %arg7: memref<128x128xbf16, #tpu.memory_space<vmem>>, %arg8: memref<1x128xf32, #tpu.memory_space<vmem>>, %arg9: memref<16x128xbf16, #tpu.memory_space<vmem>>, %arg10: memref<1x128xf32, #tpu.memory_space<vmem>>, %arg11: memref<128x128xbf16, #tpu.memory_space<vmem>>, %arg12: memref<1x128xf32, #tpu.memory_space<vmem>>, %arg13: memref<128x128xbf16, #tpu.memory_space<vmem>>, %arg14: memref<1x128xf32, #tpu.memory_space<vmem>>, %arg15: memref<64x128xbf16, #tpu.memory_space<vmem>>, %arg16: memref<64x128xbf16, #tpu.memory_space<vmem>>) attributes {dimension_semantics = [#tpu.dimension_semantics<parallel>], iteration_bounds = array<i64: 2>, scalar_prefetch = 0 : i64, scratch_operands = 0 : i64, tpu.core_type = #tpu.core_type<tc>, window_params = [{transform_indices = @transform_0, window_bounds = array<i64: 64, 16>}, {transform_indices = @transform_1, window_bounds = array<i64: 64, 16>}, {pipeline_mode = #tpu.pipeline_mode<synchronous>, transform_indices = @transform_2, window_bounds = array<i64: 16, 128>}, {pipeline_mode = #tpu.pipeline_mode<synchronous>, transform_indices = @transform_3, window_bounds = array<i64: 1, 128>}, {pipeline_mode = #tpu.pipeline_mode<synchronous>, transform_indices = @transform_4, window_bounds = array<i64: 128, 128>}, {pipeline_mode = #tpu.pipeline_mode<synchronous>, transform_indices = @transform_5, window_bounds = array<i64: 1, 128>}, {pipeline_mode = #tpu.pipeline_mode<synchronous>, transform_indices = @transform_6, window_bounds = array<i64: 128, 128>}, {pipeline_mode = #tpu.pipeline_mode<synchronous>, transform_indices = @transform_7, window_bounds = array<i64: 1, 128>}, {pipeline_mode = #tpu.pipeline_mode<synchronous>, transform_indices = @transform_8, window_bounds = array<i64: 16, 128>}, {pipeline_mode = #tpu.pipeline_mode<synchronous>, transform_indices = @transform_9, window_bounds = array<i64: 1, 128>}, {pipeline_mode = #tpu.pipeline_mode<synchronous>, transform_indices = @transform_10, window_bounds = array<i64: 128, 128>}, {pipeline_mode = #tpu.pipeline_mode<synchronous>, transform_indices = @transform_11, window_bounds = array<i64: 1, 128>}, {pipeline_mode = #tpu.pipeline_mode<synchronous>, transform_indices = @transform_12, window_bounds = array<i64: 128, 128>}, {pipeline_mode = #tpu.pipeline_mode<synchronous>, transform_indices = @transform_13, window_bounds = array<i64: 1, 128>}, {transform_indices = @transform_14, window_bounds = array<i64: 64, 128>}, {transform_indices = @transform_15, window_bounds = array<i64: 64, 128>}]} {
    %c0 = arith.constant 0 : index
    %c0_0 = arith.constant 0 : index
    %0 = vector.load %arg1[%c0, %c0_0] : memref<64x16xbf16, #tpu.memory_space<vmem>>, vector<64x16xbf16>
    %c0_1 = arith.constant 0 : index
    %c0_2 = arith.constant 0 : index
    %1 = vector.load %arg3[%c0_1, %c0_2] : memref<16x128xbf16, #tpu.memory_space<vmem>>, vector<16x128xbf16>
    %c0_3 = arith.constant 0 : index
    %c0_4 = arith.constant 0 : index
    %2 = vector.load %arg4[%c0_3, %c0_4] : memref<1x128xf32, #tpu.memory_space<vmem>>, vector<1x128xf32>
    %cst = arith.constant dense<0.000000e+00> : vector<64x128xf32>
    %3 = tpu.matmul %0, %1, %cst {dimension_numbers = #tpu.dot_dimension_numbers<[1], [0], [0], [1], [0, 0, 1, 1], [], []>} : vector<64x16xbf16>, vector<16x128xbf16>, vector<64x128xf32> -> vector<64x128xf32>
    %4 = vector.broadcast %2 : vector<1x128xf32> to vector<64x128xf32>
    %5 = arith.addf %3, %4 : vector<64x128xf32>
    %cst_5 = arith.constant 0.000000e+00 : f32
    %6 = vector.broadcast %cst_5 : f32 to vector<64x128xf32>
    %7 = arith.maximumf %5, %6 : vector<64x128xf32>
    %8 = arith.truncf %7 : vector<64x128xf32> to vector<64x128xbf16>
    %c0_6 = arith.constant 0 : index
    %c0_7 = arith.constant 0 : index
    %9 = vector.load %arg5[%c0_6, %c0_7] : memref<128x128xbf16, #tpu.memory_space<vmem>>, vector<128x128xbf16>
    %c0_8 = arith.constant 0 : index
    %c0_9 = arith.constant 0 : index
    %10 = vector.load %arg6[%c0_8, %c0_9] : memref<1x128xf32, #tpu.memory_space<vmem>>, vector<1x128xf32>
    %cst_10 = arith.constant dense<0.000000e+00> : vector<64x128xf32>
    %11 = tpu.matmul %8, %9, %cst_10 {dimension_numbers = #tpu.dot_dimension_numbers<[1], [0], [0], [1], [0, 0, 1, 1], [], []>} : vector<64x128xbf16>, vector<128x128xbf16>, vector<64x128xf32> -> vector<64x128xf32>
    %12 = vector.broadcast %10 : vector<1x128xf32> to vector<64x128xf32>
    %13 = arith.addf %11, %12 : vector<64x128xf32>
    %cst_11 = arith.constant 0.000000e+00 : f32
    %14 = vector.broadcast %cst_11 : f32 to vector<64x128xf32>
    %15 = arith.maximumf %13, %14 : vector<64x128xf32>
    %16 = arith.truncf %15 : vector<64x128xf32> to vector<64x128xbf16>
    %c0_12 = arith.constant 0 : index
    %c0_13 = arith.constant 0 : index
    %17 = vector.load %arg7[%c0_12, %c0_13] : memref<128x128xbf16, #tpu.memory_space<vmem>>, vector<128x128xbf16>
    %c0_14 = arith.constant 0 : index
    %c0_15 = arith.constant 0 : index
    %18 = vector.load %arg8[%c0_14, %c0_15] : memref<1x128xf32, #tpu.memory_space<vmem>>, vector<1x128xf32>
    %cst_16 = arith.constant dense<0.000000e+00> : vector<64x128xf32>
    %19 = tpu.matmul %16, %17, %cst_16 {dimension_numbers = #tpu.dot_dimension_numbers<[1], [0], [0], [1], [0, 0, 1, 1], [], []>} : vector<64x128xbf16>, vector<128x128xbf16>, vector<64x128xf32> -> vector<64x128xf32>
    %20 = vector.broadcast %18 : vector<1x128xf32> to vector<64x128xf32>
    %21 = arith.addf %19, %20 : vector<64x128xf32>
    %22 = arith.truncf %21 : vector<64x128xf32> to vector<64x128xbf16>
    %c0_17 = arith.constant 0 : index
    %c0_18 = arith.constant 0 : index
    %23 = vector.load %arg15[%c0_17, %c0_18] : memref<64x128xbf16, #tpu.memory_space<vmem>>, vector<64x128xbf16>
    tpu.vector_store %arg15[%c0_17, %c0_18], %22 {strides = array<i32>} : memref<64x128xbf16, #tpu.memory_space<vmem>>, vector<64x128xbf16>,
    %c0_19 = arith.constant 0 : index
    %c0_20 = arith.constant 0 : index
    %24 = vector.load %arg2[%c0_19, %c0_20] : memref<64x16xbf16, #tpu.memory_space<vmem>>, vector<64x16xbf16>
    %c0_21 = arith.constant 0 : index
    %c0_22 = arith.constant 0 : index
    %25 = vector.load %arg9[%c0_21, %c0_22] : memref<16x128xbf16, #tpu.memory_space<vmem>>, vector<16x128xbf16>
    %c0_23 = arith.constant 0 : index
    %c0_24 = arith.constant 0 : index
    %26 = vector.load %arg10[%c0_23, %c0_24] : memref<1x128xf32, #tpu.memory_space<vmem>>, vector<1x128xf32>
    %cst_25 = arith.constant dense<0.000000e+00> : vector<64x128xf32>
    %27 = tpu.matmul %24, %25, %cst_25 {dimension_numbers = #tpu.dot_dimension_numbers<[1], [0], [0], [1], [0, 0, 1, 1], [], []>} : vector<64x16xbf16>, vector<16x128xbf16>, vector<64x128xf32> -> vector<64x128xf32>
    %28 = vector.broadcast %26 : vector<1x128xf32> to vector<64x128xf32>
    %29 = arith.addf %27, %28 : vector<64x128xf32>
    %cst_26 = arith.constant 0.000000e+00 : f32
    %30 = vector.broadcast %cst_26 : f32 to vector<64x128xf32>
    %31 = arith.maximumf %29, %30 : vector<64x128xf32>
    %32 = arith.truncf %31 : vector<64x128xf32> to vector<64x128xbf16>
    %c0_27 = arith.constant 0 : index
    %c0_28 = arith.constant 0 : index
    %33 = vector.load %arg11[%c0_27, %c0_28] : memref<128x128xbf16, #tpu.memory_space<vmem>>, vector<128x128xbf16>
    %c0_29 = arith.constant 0 : index
    %c0_30 = arith.constant 0 : index
    %34 = vector.load %arg12[%c0_29, %c0_30] : memref<1x128xf32, #tpu.memory_space<vmem>>, vector<1x128xf32>
    %cst_31 = arith.constant dense<0.000000e+00> : vector<64x128xf32>
    %35 = tpu.matmul %32, %33, %cst_31 {dimension_numbers = #tpu.dot_dimension_numbers<[1], [0], [0], [1], [0, 0, 1, 1], [], []>} : vector<64x128xbf16>, vector<128x128xbf16>, vector<64x128xf32> -> vector<64x128xf32>
    %36 = vector.broadcast %34 : vector<1x128xf32> to vector<64x128xf32>
    %37 = arith.addf %35, %36 : vector<64x128xf32>
    %cst_32 = arith.constant 0.000000e+00 : f32
    %38 = vector.broadcast %cst_32 : f32 to vector<64x128xf32>
    %39 = arith.maximumf %37, %38 : vector<64x128xf32>
    %40 = arith.truncf %39 : vector<64x128xf32> to vector<64x128xbf16>
    %c0_33 = arith.constant 0 : index
    %c0_34 = arith.constant 0 : index
    %41 = vector.load %arg13[%c0_33, %c0_34] : memref<128x128xbf16, #tpu.memory_space<vmem>>, vector<128x128xbf16>
    %c0_35 = arith.constant 0 : index
    %c0_36 = arith.constant 0 : index
    %42 = vector.load %arg14[%c0_35, %c0_36] : memref<1x128xf32, #tpu.memory_space<vmem>>, vector<1x128xf32>
    %cst_37 = arith.constant dense<0.000000e+00> : vector<64x128xf32>
    %43 = tpu.matmul %40, %41, %cst_37 {dimension_numbers = #tpu.dot_dimension_numbers<[1], [0], [0], [1], [0, 0, 1, 1], [], []>} : vector<64x128xbf16>, vector<128x128xbf16>, vector<64x128xf32> -> vector<64x128xf32>
    %44 = vector.broadcast %42 : vector<1x128xf32> to vector<64x128xf32>
    %45 = arith.addf %43, %44 : vector<64x128xf32>
    %46 = arith.truncf %45 : vector<64x128xf32> to vector<64x128xbf16>
    %c0_38 = arith.constant 0 : index
    %c0_39 = arith.constant 0 : index
    %47 = vector.load %arg16[%c0_38, %c0_39] : memref<64x128xbf16, #tpu.memory_space<vmem>>, vector<64x128xbf16>
    tpu.vector_store %arg16[%c0_38, %c0_39], %46 {strides = array<i32>} : memref<64x128xbf16, #tpu.memory_space<vmem>>, vector<64x128xbf16>,
    return
  }
  func.func @transform_0(%arg0: i32) -> (i32, i32) {
    %c0_i32 = arith.constant 0 : i32
    %c0_i32_0 = arith.constant 0 : i32
    return %arg0, %c0_i32 : i32, i32
  }
  func.func @transform_1(%arg0: i32) -> (i32, i32) {
    %c0_i32 = arith.constant 0 : i32
    %c0_i32_0 = arith.constant 0 : i32
    return %arg0, %c0_i32 : i32, i32
  }
  func.func @transform_2(%arg0: i32) -> (i32, i32) {
    %c0_i32 = arith.constant 0 : i32
    %c0_i32_0 = arith.constant 0 : i32
    %c0_i32_1 = arith.constant 0 : i32
    return %c0_i32, %c0_i32_0 : i32, i32
  }
  func.func @transform_3(%arg0: i32) -> (i32, i32) {
    %c0_i32 = arith.constant 0 : i32
    %c0_i32_0 = arith.constant 0 : i32
    %c0_i32_1 = arith.constant 0 : i32
    return %c0_i32, %c0_i32_0 : i32, i32
  }
  func.func @transform_4(%arg0: i32) -> (i32, i32) {
    %c0_i32 = arith.constant 0 : i32
    %c0_i32_0 = arith.constant 0 : i32
    %c0_i32_1 = arith.constant 0 : i32
    return %c0_i32, %c0_i32_0 : i32, i32
  }
  func.func @transform_5(%arg0: i32) -> (i32, i32) {
    %c0_i32 = arith.constant 0 : i32
    %c0_i32_0 = arith.constant 0 : i32
    %c0_i32_1 = arith.constant 0 : i32
    return %c0_i32, %c0_i32_0 : i32, i32
  }
  func.func @transform_6(%arg0: i32) -> (i32, i32) {
    %c0_i32 = arith.constant 0 : i32
    %c0_i32_0 = arith.constant 0 : i32
    %c0_i32_1 = arith.constant 0 : i32
    return %c0_i32, %c0_i32_0 : i32, i32
  }
  func.func @transform_7(%arg0: i32) -> (i32, i32) {
    %c0_i32 = arith.constant 0 : i32
    %c0_i32_0 = arith.constant 0 : i32
    %c0_i32_1 = arith.constant 0 : i32
    return %c0_i32, %c0_i32_0 : i32, i32
  }
  func.func @transform_8(%arg0: i32) -> (i32, i32) {
    %c0_i32 = arith.constant 0 : i32
    %c0_i32_0 = arith.constant 0 : i32
    %c0_i32_1 = arith.constant 0 : i32
    return %c0_i32, %c0_i32_0 : i32, i32
  }
  func.func @transform_9(%arg0: i32) -> (i32, i32) {
    %c0_i32 = arith.constant 0 : i32
    %c0_i32_0 = arith.constant 0 : i32
    %c0_i32_1 = arith.constant 0 : i32
    return %c0_i32, %c0_i32_0 : i32, i32
  }
  func.func @transform_10(%arg0: i32) -> (i32, i32) {
    %c0_i32 = arith.constant 0 : i32
    %c0_i32_0 = arith.constant 0 : i32
    %c0_i32_1 = arith.constant 0 : i32
    return %c0_i32, %c0_i32_0 : i32, i32
  }
  func.func @transform_11(%arg0: i32) -> (i32, i32) {
    %c0_i32 = arith.constant 0 : i32
    %c0_i32_0 = arith.constant 0 : i32
    %c0_i32_1 = arith.constant 0 : i32
    return %c0_i32, %c0_i32_0 : i32, i32
  }
  func.func @transform_12(%arg0: i32) -> (i32, i32) {
    %c0_i32 = arith.constant 0 : i32
    %c0_i32_0 = arith.constant 0 : i32
    %c0_i32_1 = arith.constant 0 : i32
    return %c0_i32, %c0_i32_0 : i32, i32
  }
  func.func @transform_13(%arg0: i32) -> (i32, i32) {
    %c0_i32 = arith.constant 0 : i32
    %c0_i32_0 = arith.constant 0 : i32
    %c0_i32_1 = arith.constant 0 : i32
    return %c0_i32, %c0_i32_0 : i32, i32
  }
  func.func @transform_14(%arg0: i32) -> (i32, i32) {
    %c0_i32 = arith.constant 0 : i32
    %c0_i32_0 = arith.constant 0 : i32
    return %arg0, %c0_i32 : i32, i32
  }
  func.func @transform_15(%arg0: i32) -> (i32, i32) {
    %c0_i32 = arith.constant 0 : i32
    %c0_i32_0 = arith.constant 0 : i32
    return %arg0, %c0_i32 : i32, i32
  }
}

</mosaic_0001>

<bundles_post_ra>
// kernel: tpu_custom_call.1
= control target key start
LH: loop header
LB: loop body
LE: loop exit
PB: predicated region body
PF: predicated region fallthrough
CT: control target
= control target key end

     0   :  { %s2216_s0 = inlined_call_operand.vmem [shape: bf16[128,16], index: 0, kind: input, shape index: {}]   ;;  %s2217_s1 = inlined_call_operand.vmem [shape: bf16[128,16], index: 1, kind: input, shape index: {}]   ;;  %s2218_s2 = inlined_call_operand.vmem [shape: bf16[16,128], index: 2, kind: input, shape index: {}]   ;;  %s2219_s3 = inlined_call_operand.vmem [shape: f32[1,128], index: 3, kind: input, shape index: {}]   ;;  %s2220_s4 = inlined_call_operand.vmem [shape: bf16[128,128], index: 4, kind: input, shape index: {}]   ;;  %s2221_s5 = inlined_call_operand.vmem [shape: f32[1,128], index: 5, kind: input, shape index: {}]   ;;  %s2222_s6 = inlined_call_operand.vmem [shape: bf16[128,128], index: 6, kind: input, shape index: {}]   ;;  %s2223_s7 = inlined_call_operand.vmem [shape: f32[1,128], index: 7, kind: input, shape index: {}]   ;;  %s2224_s8 = inlined_call_operand.vmem [shape: bf16[16,128], index: 8, kind: input, shape index: {}]   ;;  %s2225_s9 = inlined_call_operand.vmem [shape: f32[1,128], index: 9, kind: input, shape index: {}]   ;;  %s2226_s10 = inlined_call_operand.hbm [shape: bf16[128,128], index: 10, kind: input, shape index: {}]   ;;  %s2227_s11 = inlined_call_operand.vmem [shape: f32[1,128], index: 11, kind: input, shape index: {}]   ;;  %s2228_s12 = inlined_call_operand.hbm [shape: bf16[128,128], index: 12, kind: input, shape index: {}]   ;;  %s2229_s13 = inlined_call_operand.vmem [shape: f32[1,128], index: 13, kind: input, shape index: {}]   ;;  %s2230_s14 = inlined_call_operand.hbm [shape: bf16[128,128], index: 14, kind: output, shape index: {0}]   ;;  %s2231_s15 = inlined_call_operand.hbm [shape: bf16[128,128], index: 15, kind: output, shape index: {1}]  }
   0x1   :  { %2239 = sst [smem:[#allocation20_spill]] %s2216_s0 }
   0x2   :  { %2240 = sst [smem:[#allocation21_spill]] %s2217_s1 }
   0x3   :  { %2241 = sst [smem:[#allocation22_spill]] %s2218_s2 }
   0x4   :  { %21 = vsyncpa [#allocation3], 0 }
   0x5   :  { %22 = vsyncpa [#allocation6], 0 }
   0x6   :  { %23 = vsyncpa [#allocation4], 0 }
   0x7   :  { %25 = vsyncpa [#allocation4 + $0x1], 0 }
   0x8   :  { %26 = vsyncpa [#allocation9], 0 }
   0x9   :  { %28 = vsyncpa [#allocation9 + $0x1], 0  ;;  %s1978_s18 = smov 0   ;;  %s1980_s19 = smov 0  }
   0xa   :  { %s1982_s20 = smov 0   ;;  %s1984_s21 = smov 0  }
   0xb LB: > { %2242 = sst [smem:[#allocation14_spill]] %s1878_s18  ;;  %s1999_s22 = sadd.s32 4294967295, %s1890_s21   ;;  %s1890_s21 = sphi %s1984_s21, %s2258_s21   ;;  %s1886_s20 = sphi %s1982_s20, %s2260_s20   ;;  %s1882_s19 = sphi %s1980_s19, %s2262_s19   ;;  %s1878_s18 = sphi %s1978_s18, %s2261_s18  }
   0xc   : > { %2243 = sst [smem:[#allocation15_spill]] %s1886_s20  ;;  %s1363_s23 = sadd.s32 4294967294, %s1890_s21  }
   0xd   : > { %2244 = sst [smem:[#allocation16_spill]] %s1890_s21  ;;  %s2003_s24 = sadd.s32 1, %s1890_s21  }
   0xe   : > { %2245 = sst [smem:[#allocation17_spill]] %s2003_s24  ;;  %s345_s25 = sadd.s32 1, %s1886_s20 }
   0xf   : > { %s342_s26 = ssub.s32 %s1890_s21, %s2003_s24  ;;  %p355_p0 = scmp.ne.s32.totalorder %s1886_s20, %s1882_s19 }
  0x10   : > { %p343_p1 = scmp.eq.s32.totalorder %s342_s26, 0  ;;  %p356_p2 = scmp.eq.s32.totalorder %s1999_s22, 1 }
  0x11   : > { %p361_p3 = scmp.ne.s32.totalorder %s1882_s19, %s1878_s18  ;;  %p362_p4 = scmp.eq.s32.totalorder %s1363_s23, 1 }
  0x12   : > { %s2014_s27 = scalar_select %p343_p1, %s1886_s20, %s345_s25  }
  0x13   : > { %p2016_p5 = por %p356_p2, %p355_p0  ;;  %p2020_p6 = por %p362_p4, %p361_p3 }
  0x14   : > { %2246 = sst [smem:[#allocation18_spill]] %s2014_s27  ;;  %p1364_p7 = scmp.ge.s32.totalorder %s1890_s21, 1 }
  0x15   : > { %s2248_s29 = scalar_select %p2020_p6, 1, 0 }
  0x16   : > { %p395_p8 = scmp.lt.s32.totalorder %s1890_s21, 3  ;;  %p1679_p9 = scmp.eq.s32.totalorder %s1999_s22, 0 }
  0x17   : > { %2249 = sst [smem:[#allocation19_spill]] %s2248_s29  ;;  %s430_s23 = sshll.u32 %s2226_s10, 4  ;;  %s431_s23 = int_to_ptr.hbm [resolvable:$true] %s430_s23 }
  0x18   : > { %p2027_p10 = pnand %p1364_p7, %p395_p8  ;;  %s1892_s25 = smov [#allocation2]  }
  0x19   : > { %s432_s26 = sshll.u32 %s1892_s25, 4  ;;  %s447_s24 = sshll.u32 %s2228_s12, 4  ;;  %s433_s26 = int_to_ptr.vmem [resolvable:$true] %s432_s26  ;;  %s448_s24 = int_to_ptr.hbm [resolvable:$true] %s447_s24 }
  0x1a   : > { %p1665_p11 = pneg %p2027_p10  ;;  %s1893_s29 = smov 64  }
  0x1b   : > { %s1894_s18 = smov 4   ;;  %s1895_s21 = smov [#allocation5]  }
  0x1c   : > { %p1666_p12 = pnand %p1679_p9, %p1665_p11  ;;  %s449_s16 = sshll.u32 %s1895_s21, 4  ;;  %s450_s16 = int_to_ptr.vmem [resolvable:$true] %s449_s16 }
  0x1d   : > { %486 = sbr.rel (%p2027_p10) target bundleno = 873 (0x369), region = 76 }
  0x1e   : > { %1668 = dma.hbm_to_vmem [thread:$0]  (!%p1666_p12), %s431_s23, 1024, %s433_s26, [#allocation3], %s1893_s29, %s1893_s29, %s1894_s18  }
  0x1f   : > { %1671 = dma.hbm_to_vmem [thread:$0]  (!%p1666_p12), %s448_s24, 1024, %s450_s16, [#allocation6], %s1893_s29, %s1893_s29, %s1894_s18  }
  0x22   : > { %1861 = dma.done.wait (%p1679_p9), [#allocation3], 1024  }
  0x23   : > { %1863 = vsyncadd (%p1679_p9), [#allocation3], 4294966272 }
  0x24   : > { %1865 = dma.done.wait (%p1679_p9), [#allocation6], 1024  }
  0x25   : > { %1867 = vsyncadd (%p1679_p9), [#allocation6], 4294966272  ;;  %s1373_s20 = sshll.u32 %s1999_s22, 3  ;;  %s2251_s0 = sld [smem:[#allocation20_spill]]  ;;  %v1573_v3 = vld [vmem:[%s2220_s4 + $0x38] sm:$0xff]  ;;  %vm605_vm0 = vcmask 130048  }
  0x26   : > { %p551_p13 = scmp.lt.s32.totalorder %s1373_s20, 15  ;;  %s2252_s2 = sld [smem:[#allocation22_spill]]  ;;  %v1572_v4 = vld [vmem:[%s2220_s4 + $0x30] sm:$0xff]  ;;  %v1571_v5 = vld [vmem:[%s2220_s4 + $0x28] sm:$0xff]  ;;  %v1570_v6 = vld [vmem:[%s2220_s4 + $0x20] sm:$0xff] }
  0x27   : > { %v1569_v7 = vld [vmem:[%s2220_s4 + $0x18] sm:$0xff]  ;;  %v1568_v10 = vld [vmem:[%s2220_s4 + $0x10] sm:$0xff]  ;;  %v1567_v11 = vld [vmem:[%s2220_s4 + $0x8] sm:$0xff]  ;;  %s2253_s1 = sld [smem:[#allocation21_spill]]  ;;  %s1603_s17 = sshll.u32 %s1999_s22, 5 }
  0x28   : > { %s2264_s20 = smov (!%p551_p13, %s1373_s20), 15  ;;  %v1566_v12 = vld [vmem:[%s2220_s4] sm:$0xff]  ;;  %v1581_v30 = vld [vmem:[%s2222_s6 + $0x38] sm:$0xff]  ;;  %v1580_v31 = vld [vmem:[%s2222_s6 + $0x30] sm:$0xff]  ;;  %s1213_s25 = scalar_lea.hbm %s2230_s14, %s1603_s17 }
  0x29   : > { %s1374_s18 = sshll.u32 %s2264_s20, 2  ;;  %v1722_v14 = vld [vmem:[%s2219_s3] ss:$0 sm:$0xff]  ;;  %836 = vmatpush.bf16.msra.mxu2 %v1581_v30  ;;  %v1579_v34 = vld [vmem:[%s2222_s6 + $0x28] sm:$0xff]  ;;  %v1577_v46 = vld [vmem:[%s2222_s6 + $0x18] sm:$0xff]  ;;  %s2134_s20 = sand.u32 1, %s1882_s19  }
  0x2a   : > { %v1578_v38 = vld [vmem:[%s2222_s6 + $0x20] sm:$0xff]  ;;  %v1576_v47 = vld [vmem:[%s2222_s6 + $0x10] sm:$0xff]  ;;  %v1575_v48 = vld [vmem:[%s2222_s6 + $0x8] sm:$0xff]  ;;  %s2238_s26 = sshll.u32 %s2134_s20, 5  ;;  %s1216_s21 = sshll.u32 %s1213_s25, 4  ;;  %s1217_s21 = int_to_ptr.hbm [resolvable:$true] %s1216_s21 }
  0x2b   : > { %s554_s27 = scalar_lea.vmem %s2251_s0, %s1374_s18  ;;  %v1574_v49 = vld [vmem:[%s2222_s6] sm:$0xff]  ;;  %s2142_s16 = scalar_lea.vmem [#allocation7], %s2238_s26 }
  0x2c   : > { %v1565_v0 = vld [vmem:[%s2252_s2] sm:$0xff]  ;;  %v1563_v2 = vld [vmem:[%s554_s27 + $0x10] sm:$0xff]  ;;  %v1562_v8 = vld [vmem:[%s554_s27 + $0x8] sm:$0xff]  ;;  %s1214_s30 = sshll.u32 %s2142_s16, 4  ;;  %s1197_s24 = scalar_lea.sflag [#allocation4], %s2134_s20  ;;  %s1215_s30 = int_to_ptr.vmem [resolvable:$true] %s1214_s30 }
  0x2d   : > { %v1561_v1 = vld [vmem:[%s554_s27] sm:$0xff]  ;;  %625 = vmatpush.bf16.msra.mxu0 %v1565_v0  ;;  %1651 = vmatpush.bf16.msra.mxu1 %v1565_v0  ;;  %v1564_v9 = vld [vmem:[%s554_s27 + $0x18] sm:$0xff]  ;;  %s560_s23 = scalar_lea.vmem %s2253_s1, %s1374_s18  ;;  %s1802_s27 = sshra.s32 %s1217_s21, 4  ;;  %s1803_s27 = int_to_ptr.hbm [resolvable:$true] %s1802_s27 }
  0x2e   : > { %837 = vmatpush.bf16.msra.mxu2 %v1580_v31  ;;  %v1586_v50 = vld [vmem:[%s2224_s8] sm:$0xff]  ;;  %s1804_s29 = scalar_lea.hbm %s1803_s27, 32  ;;  %p1809_p3 = scmp.lt.s32.totalorder %s1803_s27, %s2230_s14 }
  0x2f   : > { %1652 = vmatpush.bf16.msra.mxu3 %v1586_v50  ;;  %v1723_v52 = vld [vmem:[%s2221_s5] ss:$0 sm:$0xff]  ;;  %p1805_p0 = scmp.ne.s32.totalorder %s1803_s27, %s1804_s29 }
  0x30   : > { %1397 = vmatmul.msk.bf16.vlgmr.msra.gmra.mxu0 %vm605_vm0, %v1561_v1  ;;  %1399 = vmatmul.msk.bf16.vlgmr.msra.gmra.mxu1 %vm605_vm0, %v1563_v2 }
  0x31   : > { %727 = vmatpush.bf16.msrb.mxu1 %v1573_v3  ;;  %p1806_p1 = pnand %p1805_p0, %p2016_p5 }
  0x32   : > { %838 = vmatpush.bf16.msra.mxu2 %v1579_v34 }
  0x33   : > { %p1807_p2 = pneg %p1806_p1 }
  0x35   : > { %728 = vmatpush.bf16.msrb.mxu1 %v1572_v4 }
  0x36   : > { %839 = vmatpush.bf16.msra.mxu2 %v1578_v38  ;;  %v1588_v38 = vld [vmem:[#allocation2 + $0x8] sm:$0xff] }
  0x39   : > { %729 = vmatpush.bf16.msrb.mxu1 %v1571_v5 }
  0x3a   : > { %840 = vmatpush.bf16.msra.mxu2 %v1577_v46 }
  0x3d   : > { %730 = vmatpush.bf16.msrb.mxu1 %v1570_v6 }
  0x3e   : > { %841 = vmatpush.bf16.msra.mxu2 %v1576_v47 }
  0x40   : > { %1398 = vmatmul.msk.bf16.gmra.mxu0 %vm605_vm0, %v1562_v8  ;;  %1400 = vmatmul.msk.bf16.gmra.mxu1 %vm605_vm0, %v1564_v9  ;;  %v1583_v9 = vld [vmem:[%s560_s23 + $0x8] sm:$0xff] }
  0x41   : > { %731 = vmatpush.bf16.msrb.mxu1 %v1569_v7  ;;  %1486 = vmatmul.msk.bf16.vlgmr.msra.gmra.mxu3 %vm605_vm0, %v1583_v9 }
  0x42   : > { %842 = vmatpush.bf16.msra.mxu2 %v1575_v48 }
  0x45   : > { %732 = vmatpush.bf16.msrb.mxu1 %v1568_v10 }
  0x46   : > { %843 = vmatpush.bf16.msra.mxu2 %v1574_v49 }
  0x49   : > { %733 = vmatpush.bf16.msrb.mxu1 %v1567_v11 }
  0x4a   : > { %940 = vmatpush.bf16.msrb.mxu2 %v1586_v50 }
  0x4d   : > { %734 = vmatpush.bf16.msrb.mxu1 %v1566_v12 }
  0xad   : > { %v627_v13 = vpop.f32.mrf.mxu0  ;;  %v637_v22 = vpop.f32.mrf.mxu1 }
  0xae   : > { %v628_v15 = vadd.f32 %v1722_v14, %v627_v13  ;;  %v638_v32 = vadd.f32 %v1722_v14, %v637_v22 }
  0xb0   : > { %v647_v18 = vmax.f32 %v628_v15, 0.0  ;;  %v651_v36 = vmax.f32 %v638_v32, 0.0 }
  0xb5   : > { %v629_v16 = vpop.f32.mrf.mxu0  ;;  %v639_v29 = vpop.f32.mrf.mxu1 }
  0xb6   : > { %v630_v17 = vadd.f32 %v1722_v14, %v629_v16  ;;  %v640_v33 = vadd.f32 %v1722_v14, %v639_v29  ;;  %v1592_v29 = vld [vmem:[#allocation2 + $0x28] sm:$0xff] }
  0xb8   : > { %v648_v19 = vmax.f32 %v630_v17, 0.0  ;;  %v652_v37 = vmax.f32 %v640_v33, 0.0  ;;  %v1584_v17 = vld [vmem:[%s560_s23 + $0x10] sm:$0xff]  ;;  %v1591_v33 = vld [vmem:[#allocation2 + $0x20] sm:$0xff] }
  0xb9   : > { %1487 = vmatmul.msk.bf16.gmra.mxu3 %vm605_vm0, %v1584_v17 }
  0xba   : > { %v655_v20 = vpack.c.bf16 %v648_v19, %v647_v18  ;;  %v657_v39 = vpack.c.bf16 %v652_v37, %v651_v36  ;;  %v1582_v18 = vld [vmem:[%s560_s23] sm:$0xff]  ;;  %v1585_v19 = vld [vmem:[%s560_s23 + $0x18] sm:$0xff]  ;;  %v1589_v37 = vld [vmem:[#allocation2 + $0x10] sm:$0xff] }
  0xbc   : > { %735 = vmatmul.bf16.vlgmr.msrb.gmra.mxu1 %v655_v20 }
  0xbd   : > { %v632_v21 = vpop.f32.mrf.mxu0  ;;  %v642_v35 = vpop.f32.mrf.mxu1 }
  0xbe   : > { %v633_v23 = vadd.f32 %v1722_v14, %v632_v21  ;;  %v643_v41 = vadd.f32 %v1722_v14, %v642_v35  ;;  %v1724_v21 = vld [vmem:[%s2223_s7] ss:$0 sm:$0xff]  ;;  %v1590_v35 = vld [vmem:[#allocation2 + $0x18] sm:$0xff] }
  0xc0   : > { %v649_v26 = vmax.f32 %v633_v23, 0.0  ;;  %v653_v43 = vmax.f32 %v643_v41, 0.0 }
  0xc4   : > { %v947_v50 = vpop.f32.mrf.mxu3 }
  0xc5   : > { %v634_v24 = vpop.f32.mrf.mxu0  ;;  %v644_v40 = vpop.f32.mrf.mxu1 }
  0xc6   : > { %v635_v25 = vadd.f32 %v1722_v14, %v634_v24  ;;  %v645_v42 = vadd.f32 %v1722_v14, %v644_v40 }
  0xc8   : > { %v650_v27 = vmax.f32 %v635_v25, 0.0  ;;  %v654_v44 = vmax.f32 %v645_v42, 0.0  ;;  %v1587_v42 = vld [vmem:[#allocation2] sm:$0xff] }
  0xc9   : > { %1488 = vmatmul.msk.bf16.gmra.mxu3 %vm605_vm0, %v1585_v19 }
  0xca   : > { %v656_v28 = vpack.c.bf16 %v650_v27, %v649_v26  ;;  %v658_v45 = vpack.c.bf16 %v654_v44, %v653_v43  ;;  %v1594_v26 = vld [vmem:[#allocation2 + $0x38] sm:$0xff] }
  0xcb   : > { %1042 = vmatpush.bf16.msrb.mxu0 %v1594_v26 }
  0xcc   : > { %740 = vmatmul.bf16.gmra.mxu1 %v656_v28  ;;  %v1593_v28 = vld [vmem:[#allocation2 + $0x30] sm:$0xff] }
  0xcf   : > { %1043 = vmatpush.bf16.msrb.mxu0 %v1593_v28 }
  0xd3   : > { %1044 = vmatpush.bf16.msrb.mxu0 %v1592_v29 }
  0xd7   : > { %1045 = vmatpush.bf16.msrb.mxu0 %v1591_v33 }
  0xdb   : > { %1046 = vmatpush.bf16.msrb.mxu0 %v1590_v35 }
  0xdc   : > { %745 = vmatmul.bf16.gmra.mxu1 %v657_v39 }
  0xdf   : > { %1047 = vmatpush.bf16.msrb.mxu0 %v1589_v37 }
  0xe3   : > { %1048 = vmatpush.bf16.msrb.mxu0 %v1588_v38 }
  0xe7   : > { %1049 = vmatpush.bf16.msrb.mxu0 %v1587_v42 }
  0xec   : > { %750 = vmatmul.bf16.gmra.mxu1 %v658_v45 }
 0x139   : > { %v736_v51 = vpop.f32.mrf.mxu1 }
 0x13a   : > { %v737_v53 = vadd.f32 %v1723_v52, %v736_v51  ;;  %v1725_v51 = vld [vmem:[%s2225_s9] ss:$0 sm:$0xff] }
 0x13c   : > { %v756_v56 = vmax.f32 %v737_v53, 0.0 }
 0x141   : > { %v738_v54 = vpop.f32.mrf.mxu1 }
 0x142   : > { %v739_v55 = vadd.f32 %v1723_v52, %v738_v54 }
 0x144   : > { %v757_v57 = vmax.f32 %v739_v55, 0.0  ;;  %v949_v55 = vpop.f32.mrf.mxu3 }
 0x146   : > { %v764_v58 = vpack.c.bf16 %v757_v57, %v756_v56 }
 0x148   : > { %844 = vmatmul.bf16.vlgmr.msra.gmra.mxu2 %v764_v58 }
 0x149   : > { %v741_v59 = vpop.f32.mrf.mxu1 }
 0x14a   : > { %v742_v60 = vadd.f32 %v1723_v52, %v741_v59 }
 0x14c   : > { %v758_v63 = vmax.f32 %v742_v60, 0.0  ;;  %v952_v59 = vpop.f32.mrf.mxu3  ;;  %v948_v60 = vadd.f32 %v1725_v51, %v947_v50 }
 0x151   : > { %v743_v61 = vpop.f32.mrf.mxu1 }
 0x152   : > { %v744_v62 = vadd.f32 %v1723_v52, %v743_v61  ;;  %v950_v61 = vadd.f32 %v1725_v51, %v949_v55 }
 0x154   : > { %v759_v0 = vmax.f32 %v744_v62, 0.0  ;;  %v964_v62 = vmax.f32 %v948_v60, 0.0 }
 0x156   : > { %v765_v1 = vpack.c.bf16 %v759_v0, %v758_v63  ;;  %v965_v63 = vmax.f32 %v950_v61, 0.0 }
 0x158   : > { %849 = vmatmul.bf16.gmra.mxu2 %v765_v1  ;;  %v971_v0 = vpack.c.bf16 %v965_v63, %v964_v62  ;;  %v954_v1 = vpop.f32.mrf.mxu3 }
 0x159   : > { %v746_v2 = vpop.f32.mrf.mxu1 }
 0x15a   : > { %v747_v3 = vadd.f32 %v1723_v52, %v746_v2  ;;  %v1602_v2 = vld [vmem:[#allocation5 + $0x38] sm:$0xff] }
 0x15b   : > { %1151 = vmatpush.bf16.msrb.mxu3 %v1602_v2 }
 0x15c   : > { %v760_v6 = vmax.f32 %v747_v3, 0.0  ;;  %v1601_v3 = vld [vmem:[#allocation5 + $0x30] sm:$0xff] }
 0x15f   : > { %1152 = vmatpush.bf16.msrb.mxu3 %v1601_v3 }
 0x161   : > { %v748_v4 = vpop.f32.mrf.mxu1 }
 0x162   : > { %v749_v5 = vadd.f32 %v1723_v52, %v748_v4  ;;  %v953_v4 = vadd.f32 %v1725_v51, %v952_v59 }
 0x164   : > { %v761_v7 = vmax.f32 %v749_v5, 0.0  ;;  %v955_v5 = vadd.f32 %v1725_v51, %v954_v1 }
 0x166   : > { %v766_v8 = vpack.c.bf16 %v761_v7, %v760_v6  ;;  %v1600_v6 = vld [vmem:[#allocation5 + $0x28] sm:$0xff]  ;;  %v957_v7 = vpop.f32.mrf.mxu3  ;;  %v967_v9 = vmax.f32 %v955_v5, 0.0 }
 0x167   : > { %1153 = vmatpush.bf16.msrb.mxu3 %v1600_v6 }
 0x168   : > { %854 = vmatmul.bf16.gmra.mxu2 %v766_v8  ;;  %v966_v8 = vmax.f32 %v953_v4, 0.0 }
 0x169   : > { %v751_v10 = vpop.f32.mrf.mxu1 }
 0x16a   : > { %v752_v11 = vadd.f32 %v1723_v52, %v751_v10  ;;  %v1599_v10 = vld [vmem:[#allocation5 + $0x20] sm:$0xff] }
 0x16b   : > { %1154 = vmatpush.bf16.msrb.mxu3 %v1599_v10 }
 0x16c   : > { %v762_v14 = vmax.f32 %v752_v11, 0.0  ;;  %v972_v11 = vpack.c.bf16 %v967_v9, %v966_v8 }
 0x171   : > { %v753_v12 = vpop.f32.mrf.mxu1 }
 0x172   : > { %v754_v13 = vadd.f32 %v1723_v52, %v753_v12  ;;  %v1598_v12 = vld [vmem:[#allocation5 + $0x18] sm:$0xff] }
 0x173   : > { %1155 = vmatpush.bf16.msrb.mxu3 %v1598_v12 }
 0x174   : > { %v763_v15 = vmax.f32 %v754_v13, 0.0  ;;  %v1597_v13 = vld [vmem:[#allocation5 + $0x10] sm:$0xff] }
 0x176   : > { %v767_v16 = vpack.c.bf16 %v763_v15, %v762_v14  ;;  %v959_v14 = vpop.f32.mrf.mxu3  ;;  %v958_v15 = vadd.f32 %v1725_v51, %v957_v7 }
 0x177   : > { %1156 = vmatpush.bf16.msrb.mxu3 %v1597_v13 }
 0x178   : > { %859 = vmatmul.bf16.gmra.mxu2 %v767_v16  ;;  %v960_v16 = vadd.f32 %v1725_v51, %v959_v14  ;;  %v968_v17 = vmax.f32 %v958_v15, 0.0 }
 0x188   : > { %1485 = vmatmul.msk.bf16.vlgmr.msrb.gmra.mxu2 %vm605_vm0, %v1582_v18  ;;  %v969_v18 = vmax.f32 %v960_v16, 0.0 }
 0x18a   : > { %v973_v19 = vpack.c.bf16 %v969_v18, %v968_v17 }
 0x1cb   : > { %v845_v20 = vpop.f32.mrf.mxu2 }
 0x1cc   : > { %v846_v23 = vadd.f32 %v1724_v21, %v845_v20  ;;  %v1596_v20 = vld [vmem:[#allocation5 + $0x8] sm:$0xff] }
 0x1cd   : > { %1157 = vmatpush.bf16.msrb.mxu3 %v1596_v20 }
 0x1d3   : > { %v847_v22 = vpop.f32.mrf.mxu2 }
 0x1d4   : > { %v848_v24 = vadd.f32 %v1724_v21, %v847_v22 }
 0x1d6   : > { %v1608_v25 = vpack.c.bf16 %v848_v24, %v846_v23  ;;  %v1726_v23 = vld [vmem:[%s2227_s11] ss:$0 sm:$0xff] }
 0x1d8   : > { %1609 = vst [vmem:[%s2142_s16] sm:$0xff] %v1608_v25  }
 0x1db   : > { %v850_v27 = vpop.f32.mrf.mxu2 }
 0x1dc   : > { %v851_v31 = vadd.f32 %v1724_v21, %v850_v27 }
 0x1e3   : > { %v852_v30 = vpop.f32.mrf.mxu2 }
 0x1e4   : > { %v853_v32 = vadd.f32 %v1724_v21, %v852_v30 }
 0x1e6   : > { %v1613_v34 = vpack.c.bf16 %v853_v32, %v851_v31 }
 0x1e8   : > { %1645 = vst [vmem:[%s2142_s16 + $0x8] sm:$0xff] %v1613_v34  }
 0x1eb   : > { %v855_v36 = vpop.f32.mrf.mxu2 }
 0x1ec   : > { %v856_v40 = vadd.f32 %v1724_v21, %v855_v36 }
 0x1f3   : > { %v857_v39 = vpop.f32.mrf.mxu2 }
 0x1f4   : > { %v858_v41 = vadd.f32 %v1724_v21, %v857_v39 }
 0x1f6   : > { %v1618_v43 = vpack.c.bf16 %v858_v41, %v856_v40 }
 0x1f8   : > { %1646 = vst [vmem:[%s2142_s16 + $0x10] sm:$0xff] %v1618_v43  }
 0x1fb   : > { %v860_v44 = vpop.f32.mrf.mxu2 }
 0x1fc   : > { %v861_v46 = vadd.f32 %v1724_v21, %v860_v44 }
 0x203   : > { %v862_v45 = vpop.f32.mrf.mxu2 }
 0x204   : > { %v863_v47 = vadd.f32 %v1724_v21, %v862_v45  ;;  %v1595_v21 = vld [vmem:[#allocation5] sm:$0xff] }
 0x205   : > { %1158 = vmatpush.bf16.msrb.mxu3 %v1595_v21 }
 0x206   : > { %v1623_v48 = vpack.c.bf16 %v863_v47, %v861_v46 }
 0x208   : > { %1647 = vst [vmem:[%s2142_s16 + $0x18] sm:$0xff] %v1623_v48   ;;  %s1808_s16 = scalar_lea.hbm %s2230_s14, 64 }
 0x209   : > { %p1810_p4 = scmp.lt.s32.totalorder %s1808_s16, %s1804_s29 }
 0x20b   : > { %v942_v49 = vpop.f32.mrf.mxu2  ;;  %p1811_p7 = por %p1810_p4, %p1809_p3 }
 0x20c   : > { %v943_v52 = vadd.f32 %v1725_v51, %v942_v49 }
 0x20d   : > { %p1812_p8 = pnand %p1811_p7, %p1807_p2 }
 0x20e   : > { %v962_v56 = vmax.f32 %v943_v52, 0.0 }
 0x213   : > { %v944_v53 = vpop.f32.mrf.mxu2 }
 0x214   : > { %v945_v54 = vadd.f32 %v1725_v51, %v944_v53 }
 0x216   : > { %v963_v57 = vmax.f32 %v945_v54, 0.0 }
 0x218   : > { %v970_v58 = vpack.c.bf16 %v963_v57, %v962_v56 }
 0x21a   : > { %1050 = vmatmul.bf16.vlgmr.msrb.gmra.mxu0 %v970_v58 }
 0x22a   : > { %1055 = vmatmul.bf16.gmra.mxu0 %v971_v0 }
 0x23a   : > { %1060 = vmatmul.bf16.gmra.mxu0 %v972_v11 }
 0x24a   : > { %1065 = vmatmul.bf16.gmra.mxu0 %v973_v19 }
 0x297   : > { %v1051_v22 = vpop.f32.mrf.mxu0 }
 0x298   : > { %v1052_v24 = vadd.f32 %v1726_v23, %v1051_v22 }
 0x29a   : > { %v1071_v27 = vmax.f32 %v1052_v24, 0.0 }
 0x29f   : > { %v1053_v25 = vpop.f32.mrf.mxu0 }
 0x2a0   : > { %v1054_v26 = vadd.f32 %v1726_v23, %v1053_v25 }
 0x2a2   : > { %v1072_v28 = vmax.f32 %v1054_v26, 0.0 }
 0x2a4   : > { %v1079_v29 = vpack.c.bf16 %v1072_v28, %v1071_v27 }
 0x2a6   : > { %1159 = vmatmul.bf16.vlgmr.msrb.gmra.mxu3 %v1079_v29 }
 0x2a7   : > { %v1056_v30 = vpop.f32.mrf.mxu0 }
 0x2a8   : > { %v1057_v31 = vadd.f32 %v1726_v23, %v1056_v30 }
 0x2aa   : > { %v1073_v34 = vmax.f32 %v1057_v31, 0.0 }
 0x2af   : > { %v1058_v32 = vpop.f32.mrf.mxu0 }
 0x2b0   : > { %v1059_v33 = vadd.f32 %v1726_v23, %v1058_v32 }
 0x2b2   : > { %v1074_v35 = vmax.f32 %v1059_v33, 0.0 }
 0x2b4   : > { %v1080_v36 = vpack.c.bf16 %v1074_v35, %v1073_v34 }
 0x2b6   : > { %1164 = vmatmul.bf16.gmra.mxu3 %v1080_v36 }
 0x2b7   : > { %v1061_v37 = vpop.f32.mrf.mxu0 }
 0x2b8   : > { %v1062_v38 = vadd.f32 %v1726_v23, %v1061_v37 }
 0x2ba   : > { %v1075_v41 = vmax.f32 %v1062_v38, 0.0 }
 0x2bf   : > { %v1063_v39 = vpop.f32.mrf.mxu0 }
 0x2c0   : > { %v1064_v40 = vadd.f32 %v1726_v23, %v1063_v39 }
 0x2c2   : > { %v1076_v42 = vmax.f32 %v1064_v40, 0.0 }
 0x2c4   : > { %v1081_v43 = vpack.c.bf16 %v1076_v42, %v1075_v41 }
 0x2c6   : > { %1169 = vmatmul.bf16.gmra.mxu3 %v1081_v43 }
 0x2c7   : > { %v1066_v44 = vpop.f32.mrf.mxu0 }
 0x2c8   : > { %v1067_v45 = vadd.f32 %v1726_v23, %v1066_v44 }
 0x2ca   : > { %v1077_v48 = vmax.f32 %v1067_v45, 0.0 }
 0x2cf   : > { %v1068_v46 = vpop.f32.mrf.mxu0 }
 0x2d0   : > { %v1069_v47 = vadd.f32 %v1726_v23, %v1068_v46 }
 0x2d2   : > { %v1078_v49 = vmax.f32 %v1069_v47, 0.0 }
 0x2d4   : > { %v1082_v50 = vpack.c.bf16 %v1078_v49, %v1077_v48 }
 0x2d6   : > { %1174 = vmatmul.bf16.gmra.mxu3 %v1082_v50 }
 0x2d7   : > { %1815 = shalt.err (!%p1812_p8)
}
 0x2d8   : > { %s1896_s23 = smov 64   ;;  %s1897_s18 = smov 4   ;;  %v1727_v52 = vld [vmem:[%s2229_s13] ss:$0 sm:$0xff] }
 0x2d9   : > { %1661 = dma.vmem_to_hbm [thread:$0]  (%p2016_p5), %s1215_s30, 512, %s1217_s21, %s1197_s24, %s1896_s23, %s1896_s23, %s1897_s18  }
 0x2da   : > { %s2254_s1 = sshll.u32 %s2134_s20, 5  ;;  %s1230_s21 = scalar_lea.hbm %s2231_s15, %s1603_s17 }
 0x2db   : > { %s549_s2 = scalar_lea.vmem [#allocation8], %s2254_s1  ;;  %s1233_s27 = sshll.u32 %s1230_s21, 4  ;;  %s1234_s27 = int_to_ptr.hbm [resolvable:$true] %s1233_s27 }
 0x2dc   : > { %s1231_s24 = sshll.u32 %s549_s2, 4  ;;  %s1202_s29 = scalar_lea.sflag [#allocation9], %s2134_s20  ;;  %s1232_s24 = int_to_ptr.vmem [resolvable:$true] %s1231_s24 }
 0x2dd   : > { %s1830_s16 = sshra.s32 %s1234_s27, 4  ;;  %s1836_s17 = scalar_lea.hbm %s2231_s15, 64  ;;  %s1831_s16 = int_to_ptr.hbm [resolvable:$true] %s1830_s16 }
 0x2de   : > { %s1832_s0 = scalar_lea.hbm %s1831_s16, 32  ;;  %p1837_p12 = scmp.lt.s32.totalorder %s1831_s16, %s2231_s15 }
 0x2df   : > { %p1833_p9 = scmp.ne.s32.totalorder %s1831_s16, %s1832_s0  ;;  %p1838_p13 = scmp.lt.s32.totalorder %s1836_s17, %s1832_s0 }
 0x2e1   : > { %p1834_p10 = pnand %p1833_p9, %p2016_p5  ;;  %p1839_p0 = por %p1838_p13, %p1837_p12 }
 0x2e3   : > { %p1835_p11 = pneg %p1834_p10 }
 0x2e5   : > { %p1840_p1 = pnand %p1839_p0, %p1835_p11 }
 0x329   : > { %v1160_v51 = vpop.f32.mrf.mxu3 }
 0x32a   : > { %v1161_v54 = vadd.f32 %v1727_v52, %v1160_v51 }
 0x331   : > { %v1162_v53 = vpop.f32.mrf.mxu3 }
 0x332   : > { %v1163_v55 = vadd.f32 %v1727_v52, %v1162_v53 }
 0x334   : > { %v1628_v56 = vpack.c.bf16 %v1163_v55, %v1161_v54 }
 0x336   : > { %1629 = vst [vmem:[%s549_s2] sm:$0xff] %v1628_v56  }
 0x339   : > { %v1165_v57 = vpop.f32.mrf.mxu3 }
 0x33a   : > { %v1166_v59 = vadd.f32 %v1727_v52, %v1165_v57 }
 0x341   : > { %v1167_v58 = vpop.f32.mrf.mxu3 }
 0x342   : > { %v1168_v60 = vadd.f32 %v1727_v52, %v1167_v58 }
 0x344   : > { %v1633_v61 = vpack.c.bf16 %v1168_v60, %v1166_v59 }
 0x346   : > { %1648 = vst [vmem:[%s549_s2 + $0x8] sm:$0xff] %v1633_v61  }
 0x349   : > { %v1170_v62 = vpop.f32.mrf.mxu3 }
 0x34a   : > { %v1171_v0 = vadd.f32 %v1727_v52, %v1170_v62 }
 0x351   : > { %v1172_v63 = vpop.f32.mrf.mxu3 }
 0x352   : > { %v1173_v1 = vadd.f32 %v1727_v52, %v1172_v63 }
 0x354   : > { %v1638_v2 = vpack.c.bf16 %v1173_v1, %v1171_v0 }
 0x356   : > { %1649 = vst [vmem:[%s549_s2 + $0x10] sm:$0xff] %v1638_v2  }
 0x359   : > { %v1175_v3 = vpop.f32.mrf.mxu3 }
 0x35a   : > { %v1176_v5 = vadd.f32 %v1727_v52, %v1175_v3 }
 0x361   : > { %v1177_v4 = vpop.f32.mrf.mxu3 }
 0x362   : > { %v1178_v6 = vadd.f32 %v1727_v52, %v1177_v4 }
 0x364   : > { %v1643_v7 = vpack.c.bf16 %v1178_v6, %v1176_v5 }
 0x366   : > { %1650 = vst [vmem:[%s549_s2 + $0x18] sm:$0xff] %v1643_v7  }
 0x367   : > { %1843 = shalt.err (!%p1840_p1)
}
 0x368   : > { %1662 = dma.vmem_to_hbm [thread:$0]  (%p2016_p5), %s1232_s24, 512, %s1234_s27, %s1202_s29, %s1896_s23, %s1896_s23, %s1897_s18  }
 0x369 PF: > { %s2255_s20 = sld [smem:[#allocation16_spill]] }
 0x36a   : > { %s2256_s2 = sld [smem:[#allocation14_spill]] }
 0x36f   : > { %p1683_p2 = scmp.ge.s32.totalorder %s2255_s20, 2 }
 0x370   : > { %s1248_s21 = sand.u32 1, %s2256_s2  }
 0x371   : > { %p1673_p3 = pnand %p1683_p2, %p2020_p6  ;;  %s1249_s16 = scalar_lea.sflag [#allocation4], %s1248_s21 }
 0x373   : > { %p1674_p4 = pneg %p1673_p3 }
 0x375   : > { %1869 = dma.done.wait (%p1674_p4), %s1249_s16, 512  }
 0x376   : > { %1871 = vsyncadd (%p1674_p4), %s1249_s16, 4294966784  ;;  %s1259_s0 = scalar_lea.sflag [#allocation9], %s1248_s21 }
 0x377   : > { %1873 = dma.done.wait (%p1674_p4), %s1259_s0, 512  }
 0x378   : > { %1875 = vsyncadd (%p1674_p4), %s1259_s0, 4294966784  ;;  %s2258_s21 = sld [smem:[#allocation17_spill]]  ;;  %s2261_s18 = smov %s1882_s19 }
 0x379   : > { %s2259_s28 = sld [smem:[#allocation15_spill]] }
 0x37a   : > { %s2260_s20 = sld [smem:[#allocation18_spill]] }
 0x37e   : > { %p31_p5 = scmp.ge.s32.totalorder %s2258_s21, 4  }
 0x37f   : > { %s2262_s19 = smov %s2259_s28 }
 0x380   :  { %33 = sbr.rel (!%p31_p5) target bundleno = 11 (0xb), region = 140 }
 0x385   :  { %1265 = vsyncpa [#allocation3], 1 }
 0x386   :  { %1267 = vsyncpa [#allocation3 + $0x1], 1 }
 0x387   :  { %1268 = vsyncpa [#allocation6], 1 }
 0x388   :  { %1269 = vsyncpa [#allocation4], 1 }
 0x389   :  { %1271 = vsyncpa [#allocation4 + $0x1], 1 }
 0x38a   :  { %1272 = vsyncpa [#allocation9], 1 }
 0x38b   :  { %1274 = vsyncpa [#allocation9 + $0x1], 1 }

</bundles_post_ra>
